<compile_context>
chip_gen: v6e
topology: v6e:2x2x1
jax: 0.10.0
libtpu: 0.0.40
codegen_flags: <defaults>
</compile_context>

<pallas_src>
import functools

import jax
import jax.numpy as jnp
from jax.experimental import pallas as pl
from jax.experimental.pallas import tpu as pltpu


def _round_up(x, m):
    return ((x + m - 1) // m) * m


def _fused_mlp_kernel(x_ref, w1_ref, b1_ref, wh_ref, bh_ref, out_ref):
    # layer 1: h = relu(x @ W1 + b1)   -- bf16 MXU operands, f32 accumulate
    h = jnp.dot(x_ref[...], w1_ref[...], preferred_element_type=jnp.float32)
    h = jnp.maximum(h + b1_ref[...], 0.0)                  # f32 VPU (v5e-safe)
    # fused heads: one lane-dense 128-wide matmul  y = h @ [Wp | Wv | 0-pad]
    y = jnp.dot(h.astype(wh_ref.dtype), wh_ref[...],
                preferred_element_type=jnp.float32)
    out_ref[...] = (y + bh_ref[...]).astype(out_ref.dtype)


def prepare_params(params, compute_dtype=jnp.bfloat16):
    """One-time parameter prep (hoisted out of the per-call forward):
    fuse the two heads into one slab, pad to (8,128)-friendly tiles, and cast
    the MXU operands to bf16 (biases stay f32)."""
    w1, b1, wp, bp, wv, bv = params
    in_dim, nn_size = w1.shape
    pol_dim = wp.shape[1]
    n_heads = pol_dim + 1

    H = _round_up(nn_size, 128)      # hidden width
    N = _round_up(n_heads, 128)      # fused-head output slab width (lane dense)

    w1_p = jnp.pad(w1, ((0, 0), (0, H - nn_size))).astype(compute_dtype)
    b1_p = jnp.pad(b1, ((0, 0), (0, H - nn_size)))                     # f32
    wh_p = jnp.pad(jnp.concatenate([wp, wv], axis=1),
                   ((0, H - nn_size), (0, N - n_heads))).astype(compute_dtype)
    bh_p = jnp.pad(jnp.concatenate([bp, bv], axis=1),
                   ((0, 0), (0, N - n_heads)))                         # f32

    meta = dict(in_dim=in_dim, pol_dim=pol_dim, H=H, N=N,
                compute_dtype=compute_dtype)
    return (w1_p, b1_p, wh_p, bh_p), meta


def simple_model_forward(x, prepped, meta, *, batch_tile=1024):
    """x: (batch, hyperplane_n + 1) float32. Returns {'policy', 'value'}."""
    w1_p, b1_p, wh_p, bh_p = prepped
    in_dim = meta['in_dim']
    pol_dim = meta['pol_dim']
    H, N = meta['H'], meta['N']
    compute_dtype = meta['compute_dtype']

    batch = x.shape[0]
    assert x.shape[1] == in_dim

    # --- batch tiling: minimal padding waste, >=2 grid steps for v7x megacore ---
    n_steps = max(pl.cdiv(batch, batch_tile), 2 if batch > 8 else 1)
    bm = _round_up(pl.cdiv(batch, n_steps), 8)
    grid = pl.cdiv(batch, bm)
    batch_pad = grid * bm

    # x: pad batch only; keep feature dim unpadded (block last dim == full dim)
    x_p = jnp.pad(x, ((0, batch_pad - batch), (0, 0))).astype(compute_dtype)

    itemsize = jnp.dtype(compute_dtype).itemsize
    cost = pl.CostEstimate(
        flops=2 * batch_pad * (in_dim * H + H * N),
        transcendentals=0,
        bytes_accessed=(batch_pad * in_dim * itemsize        # x
                        + in_dim * H * itemsize + H * 4      # w1, b1
                        + H * N * itemsize + N * 4           # wh, bh
                        + batch_pad * N * 4),                # out slab
    )

    out = pl.pallas_call(
        _fused_mlp_kernel,
        out_shape=jax.ShapeDtypeStruct((batch_pad, N), jnp.float32),
        grid=(grid,),
        in_specs=[
            pl.BlockSpec((bm, in_dim), lambda i: (i, 0)),   # x: blocked over batch
            pl.BlockSpec((in_dim, H), lambda i: (0, 0)),    # w1: pinned in VMEM
            pl.BlockSpec((1, H), lambda i: (0, 0)),         # b1: pinned (f32)
            pl.BlockSpec((H, N), lambda i: (0, 0)),         # fused head W: pinned
            pl.BlockSpec((1, N), lambda i: (0, 0)),         # fused head b: pinned
        ],
        out_specs=pl.BlockSpec((bm, N), lambda i: (i, 0)),
        compiler_params=pltpu.CompilerParams(
            dimension_semantics=("parallel",),
        ),
        cost_estimate=cost,
    )(x_p, w1_p, b1_p, wh_p, bh_p)

    policy = out[:batch, :pol_dim]
    value = jnp.tanh(out[:batch, pol_dim:pol_dim + 1])   # tanh on 1 column only
    return {'policy': policy, 'value': value}


def init_params(key, hyperplane_n, nn_size=100):
    """PyTorch-default-like Linear init (uniform +/- 1/sqrt(fan_in)),
    weights stored (in_features, out_features)."""
    in_dim = hyperplane_n + 1
    pol_dim = 2 ** hyperplane_n
    ks = jax.random.split(key, 6)

    def lin(kw, kb, fan_in, fan_out):
        bound = 1.0 / jnp.sqrt(fan_in)
        w = jax.random.uniform(kw, (fan_in, fan_out), jnp.float32, -bound, bound)
        b = jax.random.uniform(kb, (1, fan_out), jnp.float32, -bound, bound)
        return w, b

    w1, b1 = lin(ks[0], ks[1], in_dim, nn_size)
    wp, bp = lin(ks[2], ks[3], nn_size, pol_dim)
    wv, bv = lin(ks[4], ks[5], nn_size, 1)
    return (w1, b1, wp, bp, wv, bv)


if __name__ == "__main__":
    hyperplane_n = 4          # -> input dim 5, policy dim 16
    batch = 8

    key = jax.random.PRNGKey(0)
    k_x, k_p = jax.random.split(key)
    x = jax.random.normal(k_x, (batch, hyperplane_n + 1), jnp.float32)
    params = init_params(k_p, hyperplane_n)

    prepped, meta = prepare_params(params)            # one-time prep
    out = simple_model_forward(x, prepped, meta)
    jax.block_until_ready(out)

    # sanity: plain-JAX f32 reference (matches the PyTorch module); loose
    # tolerance because the kernel uses bf16 MXU operands with f32 accumulate.
    w1, b1, wp, bp, wv, bv = params
    h_ref = jnp.maximum(x @ w1 + b1, 0.0)
    pol_ref = h_ref @ wp + bp
    val_ref = jnp.tanh(h_ref @ wv + bv)
    assert out['policy'].shape == (batch, 2 ** hyperplane_n)
    assert out['value'].shape == (batch, 1)
    assert jnp.allclose(out['policy'], pol_ref, atol=3e-2, rtol=3e-2)
    assert jnp.allclose(out['value'], val_ref, atol=3e-2, rtol=3e-2)

    print("KERNEL_OK")
</pallas_src>

<mosaic_0001>
module attributes {stable_mosaic.version = 11 : i64} {
  func.func @_fused_mlp_kernel(%arg0: i32, %arg1: memref<8x5xbf16, #tpu.memory_space<vmem>>, %arg2: memref<5x128xbf16, #tpu.memory_space<vmem>>, %arg3: memref<1x128xf32, #tpu.memory_space<vmem>>, %arg4: memref<128x128xbf16, #tpu.memory_space<vmem>>, %arg5: memref<1x128xf32, #tpu.memory_space<vmem>>, %arg6: memref<8x128xf32, #tpu.memory_space<vmem>>) attributes {dimension_semantics = [#tpu.dimension_semantics<parallel>], iteration_bounds = array<i64: 1>, scalar_prefetch = 0 : i64, scratch_operands = 0 : i64, tpu.core_type = #tpu.core_type<tc>, window_params = [{transform_indices = @transform_0, window_bounds = array<i64: 8, 5>}, {pipeline_mode = #tpu.pipeline_mode<synchronous>, transform_indices = @transform_1, window_bounds = array<i64: 5, 128>}, {pipeline_mode = #tpu.pipeline_mode<synchronous>, transform_indices = @transform_2, window_bounds = array<i64: 1, 128>}, {pipeline_mode = #tpu.pipeline_mode<synchronous>, transform_indices = @transform_3, window_bounds = array<i64: 128, 128>}, {pipeline_mode = #tpu.pipeline_mode<synchronous>, transform_indices = @transform_4, window_bounds = array<i64: 1, 128>}, {transform_indices = @transform_5, window_bounds = array<i64: 8, 128>}]} {
    %c0 = arith.constant 0 : index
    %c0_0 = arith.constant 0 : index
    %0 = vector.load %arg1[%c0, %c0_0] : memref<8x5xbf16, #tpu.memory_space<vmem>>, vector<8x5xbf16>
    %c0_1 = arith.constant 0 : index
    %c0_2 = arith.constant 0 : index
    %1 = vector.load %arg2[%c0_1, %c0_2] : memref<5x128xbf16, #tpu.memory_space<vmem>>, vector<5x128xbf16>
    %cst = arith.constant dense<0.000000e+00> : vector<8x128xf32>
    %2 = tpu.matmul %0, %1, %cst {dimension_numbers = #tpu.dot_dimension_numbers<[1], [0], [0], [1], [0, 0, 1, 1], [], []>} : vector<8x5xbf16>, vector<5x128xbf16>, vector<8x128xf32> -> vector<8x128xf32>
    %c0_3 = arith.constant 0 : index
    %c0_4 = arith.constant 0 : index
    %3 = vector.load %arg3[%c0_3, %c0_4] : memref<1x128xf32, #tpu.memory_space<vmem>>, vector<1x128xf32>
    %4 = vector.broadcast %3 : vector<1x128xf32> to vector<8x128xf32>
    %5 = arith.addf %2, %4 : vector<8x128xf32>
    %cst_5 = arith.constant 0.000000e+00 : f32
    %6 = vector.broadcast %cst_5 : f32 to vector<8x128xf32>
    %7 = arith.maximumf %5, %6 : vector<8x128xf32>
    %8 = arith.truncf %7 : vector<8x128xf32> to vector<8x128xbf16>
    %c0_6 = arith.constant 0 : index
    %c0_7 = arith.constant 0 : index
    %9 = vector.load %arg4[%c0_6, %c0_7] : memref<128x128xbf16, #tpu.memory_space<vmem>>, vector<128x128xbf16>
    %cst_8 = arith.constant dense<0.000000e+00> : vector<8x128xf32>
    %10 = tpu.matmul %8, %9, %cst_8 {dimension_numbers = #tpu.dot_dimension_numbers<[1], [0], [0], [1], [0, 0, 1, 1], [], []>} : vector<8x128xbf16>, vector<128x128xbf16>, vector<8x128xf32> -> vector<8x128xf32>
    %c0_9 = arith.constant 0 : index
    %c0_10 = arith.constant 0 : index
    %11 = vector.load %arg5[%c0_9, %c0_10] : memref<1x128xf32, #tpu.memory_space<vmem>>, vector<1x128xf32>
    %12 = vector.broadcast %11 : vector<1x128xf32> to vector<8x128xf32>
    %13 = arith.addf %10, %12 : vector<8x128xf32>
    %c0_11 = arith.constant 0 : index
    %c0_12 = arith.constant 0 : index
    %14 = vector.load %arg6[%c0_11, %c0_12] : memref<8x128xf32, #tpu.memory_space<vmem>>, vector<8x128xf32>
    tpu.vector_store %arg6[%c0_11, %c0_12], %13 {strides = array<i32>} : memref<8x128xf32, #tpu.memory_space<vmem>>, vector<8x128xf32>,
    return
  }
  func.func @transform_0(%arg0: i32) -> (i32, i32) {
    %c0_i32 = arith.constant 0 : i32
    %c0_i32_0 = arith.constant 0 : i32
    return %arg0, %c0_i32 : i32, i32
  }
  func.func @transform_1(%arg0: i32) -> (i32, i32) {
    %c0_i32 = arith.constant 0 : i32
    %c0_i32_0 = arith.constant 0 : i32
    %c0_i32_1 = arith.constant 0 : i32
    return %c0_i32, %c0_i32_0 : i32, i32
  }
  func.func @transform_2(%arg0: i32) -> (i32, i32) {
    %c0_i32 = arith.constant 0 : i32
    %c0_i32_0 = arith.constant 0 : i32
    %c0_i32_1 = arith.constant 0 : i32
    return %c0_i32, %c0_i32_0 : i32, i32
  }
  func.func @transform_3(%arg0: i32) -> (i32, i32) {
    %c0_i32 = arith.constant 0 : i32
    %c0_i32_0 = arith.constant 0 : i32
    %c0_i32_1 = arith.constant 0 : i32
    return %c0_i32, %c0_i32_0 : i32, i32
  }
  func.func @transform_4(%arg0: i32) -> (i32, i32) {
    %c0_i32 = arith.constant 0 : i32
    %c0_i32_0 = arith.constant 0 : i32
    %c0_i32_1 = arith.constant 0 : i32
    return %c0_i32, %c0_i32_0 : i32, i32
  }
  func.func @transform_5(%arg0: i32) -> (i32, i32) {
    %c0_i32 = arith.constant 0 : i32
    %c0_i32_0 = arith.constant 0 : i32
    return %arg0, %c0_i32 : i32, i32
  }
}

</mosaic_0001>

<bundles_post_ra>
// kernel: tpu_custom_call.1
= control target key start
LH: loop header
LB: loop body
LE: loop exit
PB: predicated region body
PF: predicated region fallthrough
CT: control target
= control target key end

     0   :  { %10 = vsyncpa [#allocation3], 0  ;;  %s457_s0 = inlined_call_operand.hbm [shape: bf16[8,5], index: 0, kind: input, shape index: {}]   ;;  %s458_s1 = inlined_call_operand.hbm [shape: bf16[5,128], index: 1, kind: input, shape index: {}]   ;;  %s459_s2 = inlined_call_operand.vmem [shape: f32[1,128], index: 2, kind: input, shape index: {}]   ;;  %s460_s3 = inlined_call_operand.hbm [shape: bf16[128,128], index: 3, kind: input, shape index: {}]   ;;  %s461_s4 = inlined_call_operand.vmem [shape: f32[1,128], index: 4, kind: input, shape index: {}]   ;;  %s462_s5 = inlined_call_operand.hbm [shape: f32[8,128], index: 5, kind: output, shape index: {}]  }
   0x1   :  { %11 = vsyncpa [#allocation6], 0 }
   0x2   :  { %12 = vsyncpa [#allocation4], 0  ;;  %s400_s18 = smov [#allocation5]   ;;  %s401_s20 = smov [#allocation2]  }
   0x3   :  { %s29_s19 = sshll.u32 %s400_s18, 4  ;;  %s19_s21 = sshll.u32 %s401_s20, 4  ;;  %s30_s19 = int_to_ptr.vmem [resolvable:$true] %s29_s19  ;;  %s20_s21 = int_to_ptr.vmem [resolvable:$true] %s19_s21 }
   0x4   :  { %s322_s22 = scalar_lea.vmem %s30_s19, 64  ;;  %p327_p1 = scmp.lt.s32.totalorder %s30_s19, %s30_s19 }
   0x5   :  { %p323_p0 = scmp.ne.s32.totalorder %s30_s19, %s322_s22  ;;  %p328_p2 = scmp.lt.s32.totalorder %s322_s22, %s322_s22 }
   0x7   :  { %p329_p3 = por %p328_p2, %p327_p1 }
   0x9   :  { %p330_p4 = pnand %p329_p3, %p323_p0 }
   0xb   :  { %333 = shalt.err (!%p330_p4)
}
   0xc   :  { %32 = dma.hbm_to_vmem [thread:$0]  %s458_s1, 64, %s30_s19, [#allocation6]  }
   0xd   :  { %s342_s25 = scalar_lea.vmem %s20_s21, 64  ;;  %p347_p6 = scmp.lt.s32.totalorder %s20_s21, %s20_s21 }
   0xe   :  { %p343_p5 = scmp.ne.s32.totalorder %s20_s21, %s342_s25  ;;  %p348_p7 = scmp.lt.s32.totalorder %s342_s25, %s342_s25 }
  0x10   :  { %p349_p8 = por %p348_p7, %p347_p6 }
  0x12   :  { %p350_p9 = pnand %p349_p8, %p343_p5 }
  0x14   :  { %353 = shalt.err (!%p350_p9)
}
  0x15   :  { %22 = dma.hbm_to_vmem [thread:$0]  %s457_s0, 64, %s20_s21, [#allocation3]  }
  0x16   :  { %s402_s28 = smov [#allocation7]  }
  0x17   :  { %s40_s29 = sshll.u32 %s402_s28, 4  ;;  %s41_s29 = int_to_ptr.vmem [resolvable:$true] %s40_s29 }
  0x18   :  { %s362_s30 = scalar_lea.vmem %s41_s29, 1024  ;;  %p367_p11 = scmp.lt.s32.totalorder %s41_s29, %s41_s29 }
  0x19   :  { %p363_p10 = scmp.ne.s32.totalorder %s41_s29, %s362_s30  ;;  %p368_p12 = scmp.lt.s32.totalorder %s362_s30, %s362_s30 }
  0x1b   :  { %p369_p13 = por %p368_p12, %p367_p11 }
  0x1d   :  { %p370_p0 = pnand %p369_p13, %p363_p10 }
  0x1f   :  { %373 = shalt.err (!%p370_p0)
}
  0x20   :  { %s403_s1 = smov 64   ;;  %s404_s6 = smov 4  }
  0x21   :  { %46 = dma.hbm_to_vmem [thread:$0]  %s460_s3, 1024, %s41_s29, [#allocation6], %s403_s1, %s403_s1, %s404_s6  }
  0x22   :  { %394 = dma.done.wait [#allocation3], 64  }
  0x23   :  { %395 = vsyncadd [#allocation3], 4294967232 }
  0x24   :  { %396 = dma.done.wait [#allocation6], 1088  }
  0x25   :  { %397 = vsyncadd [#allocation6], 4294966208  ;;  %vm72_vm0 = vcmask 1041408   ;;  %v405_v0 = vmov 0.0   ;;  %vm73_vm1 = vcmask 1042432   ;;  %v406_v1 = vmov 65535  }
  0x26   :  { %271 = vmatprep.subr.bf16.mxu0 %v405_v0  ;;  %277 = vmatprep.subr.bf16.mxu1 %v405_v0  ;;  %v74_v2 = vsel %vm72_vm0, 4294967295, %v406_v1  ;;  %vm407_vm2 = vmmov 0   ;;  %v60_v4 = vld [vmem:[#allocation5] sm:$0x7]  ;;  %v59_v7 = vld [vmem:[#allocation2] sm:$0xf] }
  0x27   :  { %273 = vmatprep.mubr.msk.bf16.mxu0 %vm407_vm2, %v405_v0  ;;  %293 = vmatprep.mubr.msk.bf16.mxu1 %vm407_vm2, %v405_v0  ;;  %v75_v3 = vsel %vm73_vm1, %v74_v2, 0  ;;  %v306_v6 = vld [vmem:[#allocation7 + $0x38] sm:$0xff]   ;;  %vm68_vm3 = vcmask 39936   ;;  %v307_v8 = vld [vmem:[#allocation7 + $0x30] sm:$0xff]   ;;  %v308_v9 = vld [vmem:[#allocation7 + $0x28] sm:$0xff]   ;;  %s408_s11 = smov [#allocation8]  }
  0x28   :  { %v77_v5 = vand.u32 %v75_v3, %v60_v4  ;;  %278 = vmatpush3.bf16.msra.mxu1 %v306_v6  ;;  %v309_v10 = vld [vmem:[#allocation7 + $0x20] sm:$0xff]   ;;  %v310_v11 = vld [vmem:[#allocation7 + $0x18] sm:$0xff]   ;;  %v311_v12 = vld [vmem:[#allocation7 + $0x10] sm:$0xff]   ;;  %s239_s12 = sshll.u32 %s408_s11, 4  ;;  %s240_s12 = int_to_ptr.vmem [resolvable:$true] %s239_s12 }
  0x29   :  { %279 = vmatprep.subr.bf16.mxu1 %v405_v0  ;;  %v312_v13 = vld [vmem:[#allocation7 + $0x8] sm:$0xff]   ;;  %v313_v14 = vld [vmem:[#allocation7] sm:$0xff]   ;;  %v249_v15 = vld [vmem:[%s459_s2] ss:$0 sm:$0xff]  ;;  %s374_s2 = scalar_lea.vmem %s240_s12, 128  ;;  %p379_p2 = scmp.lt.s32.totalorder %s240_s12, %s240_s12 }
  0x2a   :  { %272 = vmatpush3.bf16.msra.mxu0 %v77_v5  ;;  %v251_v23 = vld [vmem:[%s461_s4] ss:$0 sm:$0xff]  ;;  %p375_p1 = scmp.ne.s32.totalorder %s240_s12, %s374_s2  ;;  %p380_p3 = scmp.lt.s32.totalorder %s374_s2, %s374_s2 }
  0x2c   :  { %280 = vmatpush3.bf16.msra.mxu1 %v307_v8  ;;  %p381_p4 = por %p380_p3, %p379_p2 }
  0x2d   :  { %274 = vmatmul.mubr.msk.bf16.vlgmr.msra.gmra.mxu0 %vm68_vm3, %v59_v7  ;;  %281 = vmatprep.subr.bf16.mxu1 %v405_v0 }
  0x2e   :  { %p382_p5 = pnand %p381_p4, %p375_p1 }
  0x30   :  { %282 = vmatpush3.bf16.msra.mxu1 %v308_v9 }
  0x31   :  { %283 = vmatprep.subr.bf16.mxu1 %v405_v0 }
  0x34   :  { %284 = vmatpush3.bf16.msra.mxu1 %v309_v10 }
  0x35   :  { %285 = vmatprep.subr.bf16.mxu1 %v405_v0 }
  0x38   :  { %286 = vmatpush3.bf16.msra.mxu1 %v310_v11 }
  0x39   :  { %287 = vmatprep.subr.bf16.mxu1 %v405_v0 }
  0x3c   :  { %288 = vmatpush3.bf16.msra.mxu1 %v311_v12 }
  0x3d   :  { %289 = vmatprep.subr.bf16.mxu1 %v405_v0 }
  0x40   :  { %290 = vmatpush3.bf16.msra.mxu1 %v312_v13 }
  0x41   :  { %291 = vmatprep.subr.bf16.mxu1 %v405_v0 }
  0x44   :  { %292 = vmatpush3.bf16.msra.mxu1 %v313_v14 }
  0xed   :  { %v113_v16 = vpop.f32.mrf.mxu0 }
  0xee   :  { %v114_v17 = vadd.f32 %v249_v15, %v113_v16 }
  0xef   :  { %v275_v18 = vpop.f32.mrf.mxu0 }
  0xf0   :  { %v119_v19 = vmax.f32 %v114_v17, 0.0 }
  0xf1   :  { %v116_v20 = vpop.f32.mrf.mxu0 }
  0xf2   :  { %v120_v21 = vpack.c.bf16 %v119_v19, %v119_v19 }
  0xf3   :  { %v276_v22 = vpop.f32.mrf.mxu0 }
  0xf4   :  { %294 = vmatmul.mubr.bf16.vlgmr.msra.gmra.mxu1 %v120_v21 }
 0x1b4   :  { %v226_v24 = vpop.f32.mrf.mxu1 }
 0x1b5   :  { %v227_v25 = vadd.f32 %v251_v23, %v226_v24 }
 0x1b6   :  { %v295_v26 = vpop.f32.mrf.mxu1 }
 0x1b7   :  { %232 = vst [vmem:[#allocation8] sm:$0xff] %v227_v25 }
 0x1b8   :  { %v229_v27 = vpop.f32.mrf.mxu1 }
 0x1b9   :  { %385 = shalt.err (!%p382_p5)
}
 0x1ba   :  { %242 = dma.vmem_to_hbm [thread:$0]  %s240_s12, 128, %s462_s5, [#allocation4]   ;;  %v296_v28 = vpop.f32.mrf.mxu1 }
 0x1bb   :  { %398 = dma.done.wait [#allocation4], 128  }
 0x1bc   :  { %399 = vsyncadd [#allocation4], 4294967168 }
 0x1bd   :  { %246 = vsyncpa [#allocation3], 1 }
 0x1be   :  { %247 = vsyncpa [#allocation6], 1 }
 0x1bf   :  { %248 = vsyncpa [#allocation4], 1 }

</bundles_post_ra>
